<compile_context>
chip_gen: v7x
topology: tpu7x:2x2x1
jax: 0.10.0
libtpu: 0.0.40
codegen_flags: <defaults>
</compile_context>

<pallas_src>
import jax
import jax.numpy as jnp
from jax.experimental import pallas as pl
from jax.experimental.pallas import tpu as pltpu


def _device_kind():
    try:
        return jax.devices()[0].device_kind.lower()
    except Exception:
        return ""


def _pick_tiles(B, S, E, itemsize, b_tile, s_tile, budget, prefer_multi_core):
    """Pick (B_t, S_t) that divide (B, S), satisfy Mosaic's (8,128) block rules,
    and keep the seq tile within the per-generation VMEM budget."""
    # ---- S tile -------------------------------------------------------------
    if s_tile is not None:
        assert S % s_tile == 0, f"s_tile={s_tile} must divide S={S}"
        assert s_tile == S or s_tile % 128 == 0, (
            f"s_tile={s_tile} must be a multiple of 128 (or == S) so the "
            f"(B_t, S_t) mask/score layouts stay lane-dense and legal")
        S_t = s_tile
    else:
        S_t = S
        if 8 * S * E * itemsize > budget:
            # If we tile S, S_t must be a multiple of 128 so the (B_t, S_t)
            # mask/score layouts stay lane-dense and legal.
            cands = [d for d in range(128, S, 128) if S % d == 0]
            fits = [d for d in cands if 8 * d * E * itemsize <= budget]
            if fits:
                S_t = max(fits)
            elif cands:
                S_t = min(cands)   # smallest legal tile; may exceed budget but bounded
            # else: no legal divisor -> keep S_t = S (vmem_limit must cover it)
    # ---- B tile -------------------------------------------------------------
    if b_tile is not None:
        assert B % b_tile == 0, f"b_tile={b_tile} must divide B={B}"
        assert b_tile == B or b_tile % 8 == 0, (
            f"b_tile={b_tile} must be a multiple of 8 (or == B)")
        B_t = b_tile
    else:
        cands = [d for d in range(1, B + 1)
                 if B % d == 0 and (d == B or d % 8 == 0)]
        if prefer_multi_core and B >= 16:
            # Keep >= 2 B-tiles so the "parallel" axis can shard across both
            # TensorCores (v7x / megacore chips).
            mc = [d for d in cands if B // d >= 2]
            if mc:
                cands = mc
        fits = [d for d in cands if d * S_t * E * itemsize <= budget]
        B_t = max(fits) if fits else min(cands)
    assert B % B_t == 0 and S % S_t == 0, (B, S, B_t, S_t)
    return B_t, S_t


def _make_attention_kernel(has_mask, ew_bf16, ws_on_mxu):
    """Build the kernel body; flags are trace-time Python constants."""

    def kernel(*refs):
        if has_mask:
            seq_ref, h2_ref, mask_ref, w1t_ref, w3_ref, b3_ref, o_ref = refs
        else:
            seq_ref, h2_ref, w1t_ref, w3_ref, b3_ref, o_ref = refs
            mask_ref = None

        si = pl.program_id(1)
        B_t, S_t, E = seq_ref.shape

        seq = seq_ref[...]                                       # (B_t,S_t,E) compute dtype
        # Fold (B_t, S_t) -> one M axis: a single MXU matmul, f32 accumulation.
        x = seq.reshape(B_t * S_t, E)
        h1 = jnp.dot(x, w1t_ref[...], preferred_element_type=jnp.float32)
        if ew_bf16:
            # Packed-bf16 VPU chain (v6e/v7x); inputs are already bf16-bounded.
            h1 = h1.astype(jnp.bfloat16)
        h1 = h1.reshape(B_t, S_t, E)

        # User projection (precomputed outside, b1 folded in), broadcast over S.
        z = jnp.maximum(h1 + h2_ref[...][:, None, :], 0)         # ReLU, ew dtype

        # W3: E -> 1 projection as a lane reduction; accumulate in f32.
        scores = jnp.sum(z * w3_ref[...][None], axis=-1,
                         dtype=jnp.float32) + b3_ref[0]          # (B_t,S_t) f32

        if mask_ref is not None:
            # masked_fill_(mask, -1e9)  (the module has no softmax afterwards)
            scores = jnp.where(mask_ref[...] > 0, jnp.float32(-1.0e9), scores)

        if ws_on_mxu:
            # Weighted sum over this S tile on the MXU (idle slack); scores are
            # cast to the streaming dtype (bf16) -- tiny (B_t,S_t) cast only.
            partial = jnp.einsum(
                'bqs,bse->bqe',
                scores.reshape(B_t, 1, S_t).astype(seq.dtype), seq,
                preferred_element_type=jnp.float32).reshape(B_t, E)
        else:
            # Exact f32 VPU path (used when compute dtype is f32, incl. masked).
            partial = jnp.sum(scores[:, :, None] * seq.astype(jnp.float32), axis=1)

        # Output block is resident across the (arbitrary) S axis: accumulate.
        @pl.when(si == 0)
        def _init():
            o_ref[...] = jnp.zeros_like(o_ref)

        o_ref[...] += partial

    return kernel


def attention_forward(seq_item_embedding, user_embedding, params, mask=None, *,
                      compute_dtype=jnp.bfloat16, b_tile=None, s_tile=None,
                      elementwise_bf16=None, weighted_sum_on_mxu=None,
                      seq_tile_budget_bytes=None, vmem_limit_bytes=None):
    """Pallas forward pass equivalent to Attention.forward."""
    B, S, E = seq_item_embedding.shape
    w1, b1, w2, b2, w3, b3 = params   # PyTorch shapes: (E,E),(E,),(E,E),(E,),(1,E),(1,)
    f32 = jnp.float32
    cdt = jnp.dtype(compute_dtype)

    # --- per-generation policy -------------------------------------------
    kind = _device_kind()
    is_v5e = ("v5e" in kind) or ("v5 lite" in kind) or ("v5lite" in kind)
    is_v7 = "v7" in kind
    multi_core = is_v7 or ("v4" in kind) or ("v5p" in kind)

    if elementwise_bf16 is None:
        elementwise_bf16 = (cdt == jnp.bfloat16) and not is_v5e   # no bf16 VPU on v5e
    if weighted_sum_on_mxu is None:
        # Keep the exact f32 VPU weighted sum for f32 compute (masked -1e9 path);
        # use the MXU on the bf16 streaming (performance) path.
        weighted_sum_on_mxu = (cdt != jnp.float32)
    ew_dt = jnp.bfloat16 if elementwise_bf16 else f32

    if seq_tile_budget_bytes is None:
        seq_tile_budget_bytes = (4 << 20) if is_v7 else (8 << 20)
    if vmem_limit_bytes is None:
        # Leave headroom for double-buffered seq + tile-sized h1/z intermediates.
        vmem_limit_bytes = (48 << 20) if is_v7 else (96 << 20)

    # --- host-side prep (plain XLA) --------------------------------------
    # Tiny, S-independent user projection with b1 folded in (removes one
    # full-tile VPU add and one resident input from the kernel).
    h2 = (jnp.dot(user_embedding.astype(f32), w2.astype(f32).T)
          + b2.astype(f32) + b1.astype(f32)).astype(ew_dt)        # (B,E)

    seq_c = seq_item_embedding.astype(cdt)      # bf16 by default: halves HBM traffic
    w1t = w1.astype(cdt).T                      # (E,E): y = x @ W1.T
    w3r = w3.astype(ew_dt).reshape(1, E)
    b3r = b3.astype(f32).reshape(1)             # SMEM scalar

    B_t, S_t = _pick_tiles(B, S, E, cdt.itemsize, b_tile, s_tile,
                           seq_tile_budget_bytes, prefer_multi_core=multi_core)
    nb, ns = B // B_t, S // S_t

    in_specs = [
        pl.BlockSpec((B_t, S_t, E), lambda bi, si: (bi, si, 0)),   # seq tile (streamed)
        pl.BlockSpec((B_t, E),      lambda bi, si: (bi, 0)),       # h2p (per-B, S-invariant)
    ]
    inputs = [seq_c, h2]
    if mask is not None:
        mask_f = mask.reshape(B, S).astype(f32)                    # lane-dense (B,S)
        in_specs.append(pl.BlockSpec((B_t, S_t), lambda bi, si: (bi, si)))
        inputs.append(mask_f)
    in_specs += [
        pl.BlockSpec((E, E), lambda bi, si: (0, 0)),               # W1.T, resident
        pl.BlockSpec((1, E), lambda bi, si: (0, 0)),               # w3, resident
        pl.BlockSpec(memory_space=pltpu.MemorySpace.SMEM),         # b3 scalar
    ]
    inputs += [w1t, w3r, b3r]

    out_specs = pl.BlockSpec((B_t, E), lambda bi, si: (bi, 0))     # accumulator over si
    out_shape = jax.ShapeDtypeStruct((B, E), f32)

    flops = 2 * B * S * E * E + 2 * B * S * E + 5 * B * S * E
    bytes_accessed = (seq_c.size * cdt.itemsize
                      + h2.size * jnp.dtype(ew_dt).itemsize
                      + E * E * cdt.itemsize + E * jnp.dtype(ew_dt).itemsize
                      + B * E * 4
                      + (B * S * 4 if mask is not None else 0))
    cost = pl.CostEstimate(flops=int(flops), transcendentals=0,
                           bytes_accessed=int(bytes_accessed))

    return pl.pallas_call(
        _make_attention_kernel(mask is not None, elementwise_bf16, weighted_sum_on_mxu),
        out_shape=out_shape,
        grid=(nb, ns),
        in_specs=in_specs,
        out_specs=out_specs,
        compiler_params=pltpu.CompilerParams(
            dimension_semantics=("parallel", "arbitrary"),
            vmem_limit_bytes=int(vmem_limit_bytes)),
        cost_estimate=cost,
    )(*inputs)


def attention_reference(seq, user, params, mask=None):
    """Pure-JAX reference mirroring the PyTorch forward, for verification."""
    w1, b1, w2, b2, w3, b3 = params
    h1 = jnp.einsum('bse,fe->bsf', seq, w1) + b1
    h2 = jnp.dot(user, w2.T) + b2
    z = jax.nn.relu(h1 + h2[:, None, :])
    scores = jnp.einsum('bse,fe->bsf', z, w3)[..., 0] + b3[0]    # (B, S)
    if mask is not None:
        scores = jnp.where(mask, -1.0e9, scores)
    return jnp.sum(scores[:, :, None] * seq, axis=1)             # (B, E)


def init_params(key, E):
    """Deterministic init matching nn.Linear default shapes (uniform +-1/sqrt(fan_in))."""
    ks = jax.random.split(key, 6)
    bound = 1.0 / (E ** 0.5)
    w1 = jax.random.uniform(ks[0], (E, E), jnp.float32, -bound, bound)
    b1 = jax.random.uniform(ks[1], (E,), jnp.float32, -bound, bound)
    w2 = jax.random.uniform(ks[2], (E, E), jnp.float32, -bound, bound)
    b2 = jax.random.uniform(ks[3], (E,), jnp.float32, -bound, bound)
    w3 = jax.random.uniform(ks[4], (1, E), jnp.float32, -bound, bound)
    b3 = jax.random.uniform(ks[5], (1,), jnp.float32, -bound, bound)
    return (w1, b1, w2, b2, w3, b3)


if __name__ == "__main__":
    key = jax.random.PRNGKey(0)

    # --- Test 1: module-default small shapes, f32, no mask (tight check) ---
    B, S, E = 2, 8, 32
    k1, k2, k3, k4 = jax.random.split(key, 4)
    seq = jax.random.normal(k1, (B, S, E), jnp.float32)
    user = jax.random.normal(k2, (B, E), jnp.float32)
    params = init_params(k3, E)

    out = attention_forward(seq, user, params, mask=None, compute_dtype=jnp.float32)
    out = jax.block_until_ready(out)
    ref = attention_reference(seq, user, params, mask=None)
    assert out.shape == (B, E)
    assert jnp.allclose(out, ref, atol=1e-3, rtol=1e-3), "f32 no-mask mismatch"

    # --- Test 2: masked path, f32.  masked_fill(-1e9) (no softmax in the
    # module) makes outputs ~1e8-1e9, so the absolute error floor from f32
    # summation of the huge masked terms is ~n*eps*1e9; use a matching atol. ---
    mask = jax.random.bernoulli(k4, 0.3, (B, S))
    out_m = jax.block_until_ready(
        attention_forward(seq, user, params, mask=mask, compute_dtype=jnp.float32))
    ref_m = attention_reference(seq, user, params, mask=mask)
    assert jnp.allclose(out_m, ref_m, rtol=1e-3, atol=2e3), "f32 masked mismatch"

    # --- Test 3: real grid (2x2) with B/S tiling, output accumulation over S
    # tiles, and the bf16 fast path (MXU weighted sum, and on v6e/v7x the bf16
    # elementwise chain).  Loose tolerance vs the f32 reference. ---
    B2, S2, E2 = 16, 256, 128
    kk = jax.random.split(key, 3)
    seq2 = jax.random.normal(kk[0], (B2, S2, E2), jnp.float32)
    user2 = jax.random.normal(kk[1], (B2, E2), jnp.float32)
    params2 = init_params(kk[2], E2)
    out2 = jax.block_until_ready(
        attention_forward(seq2, user2, params2, mask=None,
                          compute_dtype=jnp.bfloat16, b_tile=8, s_tile=128))
    ref2 = attention_reference(seq2, user2, params2, mask=None)
    assert out2.shape == (B2, E2)
    assert jnp.allclose(out2, ref2, rtol=5e-2, atol=1.5), "bf16 tiled mismatch"

    print("KERNEL_OK")
</pallas_src>

<mosaic_0001>
module attributes {stable_mosaic.version = 11 : i64} {
  func.func @kernel(%arg0: i32, %arg1: i32, %arg2: memref<2x8x32xf32, #tpu.memory_space<vmem>>, %arg3: memref<2x32xf32, #tpu.memory_space<vmem>>, %arg4: memref<32x32xf32, #tpu.memory_space<vmem>>, %arg5: memref<1x32xf32, #tpu.memory_space<vmem>>, %arg6: memref<1xf32, #tpu.memory_space<smem>>, %arg7: memref<2x32xf32, #tpu.memory_space<vmem>>) attributes {dimension_semantics = [#tpu.dimension_semantics<parallel>, #tpu.dimension_semantics<arbitrary>], iteration_bounds = array<i64: 1, 1>, scalar_prefetch = 0 : i64, scratch_operands = 0 : i64, tpu.core_type = #tpu.core_type<tc>, window_params = [{transform_indices = @transform_0, window_bounds = array<i64: 2, 8, 32>}, {transform_indices = @transform_1, window_bounds = array<i64: 2, 32>}, {pipeline_mode = #tpu.pipeline_mode<synchronous>, transform_indices = @transform_2, window_bounds = array<i64: 32, 32>}, {pipeline_mode = #tpu.pipeline_mode<synchronous>, transform_indices = @transform_3, window_bounds = array<i64: 1, 32>}, {transform_indices = @transform_4, window_bounds = array<i64: 1>}, {transform_indices = @transform_5, window_bounds = array<i64: 2, 32>}]} {
    %c0 = arith.constant 0 : index
    %c0_0 = arith.constant 0 : index
    %c0_1 = arith.constant 0 : index
    %0 = vector.load %arg2[%c0, %c0_0, %c0_1] : memref<2x8x32xf32, #tpu.memory_space<vmem>>, vector<2x8x32xf32>
    %1 = vector.shape_cast %0 : vector<2x8x32xf32> to vector<16x32xf32>
    %c0_2 = arith.constant 0 : index
    %c0_3 = arith.constant 0 : index
    %2 = vector.load %arg4[%c0_2, %c0_3] : memref<32x32xf32, #tpu.memory_space<vmem>>, vector<32x32xf32>
    %cst = arith.constant dense<0.000000e+00> : vector<16x32xf32>
    %3 = tpu.matmul %1, %2, %cst {dimension_numbers = #tpu.dot_dimension_numbers<[1], [0], [0], [1], [0, 0, 1, 1], [], []>} : vector<16x32xf32>, vector<32x32xf32>, vector<16x32xf32> -> vector<16x32xf32>
    %4 = vector.shape_cast %3 : vector<16x32xf32> to vector<2x8x32xf32>
    %c0_4 = arith.constant 0 : index
    %c0_5 = arith.constant 0 : index
    %5 = vector.load %arg3[%c0_4, %c0_5] : memref<2x32xf32, #tpu.memory_space<vmem>>, vector<2x32xf32>
    %6 = vector.shape_cast %5 : vector<2x32xf32> to vector<2x1x32xf32>
    %7 = vector.broadcast %6 : vector<2x1x32xf32> to vector<2x8x32xf32>
    %8 = arith.addf %4, %7 : vector<2x8x32xf32>
    %cst_6 = arith.constant 0.000000e+00 : f32
    %9 = vector.broadcast %cst_6 : f32 to vector<2x8x32xf32>
    %10 = arith.maximumf %8, %9 : vector<2x8x32xf32>
    %c0_7 = arith.constant 0 : index
    %c0_8 = arith.constant 0 : index
    %11 = vector.load %arg5[%c0_7, %c0_8] : memref<1x32xf32, #tpu.memory_space<vmem>>, vector<1x32xf32>
    %12 = vector.shape_cast %11 : vector<1x32xf32> to vector<1x1x32xf32>
    %13 = vector.broadcast %12 : vector<1x1x32xf32> to vector<2x8x32xf32>
    %14 = arith.mulf %10, %13 : vector<2x8x32xf32>
    %cst_9 = arith.constant dense<0.000000e+00> : vector<2x8xf32>
    %15 = vector.multi_reduction <add>, %14, %cst_9 [2] : vector<2x8x32xf32> to vector<2x8xf32>
    %c0_10 = arith.constant 0 : index
    %16 = memref.load %arg6[%c0_10] : memref<1xf32, #tpu.memory_space<smem>>
    %17 = vector.broadcast %16 : f32 to vector<2x8xf32>
    %18 = arith.addf %15, %17 : vector<2x8xf32>
    %19 = vector.shape_cast %18 : vector<2x8xf32> to vector<2x8x1xf32>
    %20 = vector.broadcast %19 : vector<2x8x1xf32> to vector<2x8x32xf32>
    %21 = arith.mulf %20, %0 : vector<2x8x32xf32>
    %cst_11 = arith.constant dense<0.000000e+00> : vector<2x32xf32>
    %22 = vector.multi_reduction <add>, %21, %cst_11 [1] : vector<2x8x32xf32> to vector<2x32xf32>
    %c0_i32 = arith.constant 0 : i32
    %23 = arith.cmpi eq, %arg1, %c0_i32 : i32
    %24 = arith.extui %23 : i1 to i32
    %c0_i32_12 = arith.constant 0 : i32
    %25 = arith.cmpi ne, %24, %c0_i32_12 : i32
    scf.if %25 {
      %cst_17 = arith.constant 0.000000e+00 : f32
      %29 = vector.broadcast %cst_17 : f32 to vector<2x32xf32>
      %c0_18 = arith.constant 0 : index
      %c0_19 = arith.constant 0 : index
      %30 = vector.load %arg7[%c0_18, %c0_19] : memref<2x32xf32, #tpu.memory_space<vmem>>, vector<2x32xf32>
      tpu.vector_store %arg7[%c0_18, %c0_19], %29 {strides = array<i32>} : memref<2x32xf32, #tpu.memory_space<vmem>>, vector<2x32xf32>,
    } else {
    }
    %c0_13 = arith.constant 0 : index
    %c0_14 = arith.constant 0 : index
    %26 = vector.load %arg7[%c0_13, %c0_14] : memref<2x32xf32, #tpu.memory_space<vmem>>, vector<2x32xf32>
    %27 = arith.addf %26, %22 : vector<2x32xf32>
    %c0_15 = arith.constant 0 : index
    %c0_16 = arith.constant 0 : index
    %28 = vector.load %arg7[%c0_15, %c0_16] : memref<2x32xf32, #tpu.memory_space<vmem>>, vector<2x32xf32>
    tpu.vector_store %arg7[%c0_15, %c0_16], %27 {strides = array<i32>} : memref<2x32xf32, #tpu.memory_space<vmem>>, vector<2x32xf32>,
    return
  }
  func.func @transform_0(%arg0: i32, %arg1: i32) -> (i32, i32, i32) {
    %c0_i32 = arith.constant 0 : i32
    %c0_i32_0 = arith.constant 0 : i32
    return %arg0, %arg1, %c0_i32 : i32, i32, i32
  }
  func.func @transform_1(%arg0: i32, %arg1: i32) -> (i32, i32) {
    %c0_i32 = arith.constant 0 : i32
    %c0_i32_0 = arith.constant 0 : i32
    return %arg0, %c0_i32 : i32, i32
  }
  func.func @transform_2(%arg0: i32, %arg1: i32) -> (i32, i32) {
    %c0_i32 = arith.constant 0 : i32
    %c0_i32_0 = arith.constant 0 : i32
    %c0_i32_1 = arith.constant 0 : i32
    return %c0_i32, %c0_i32_0 : i32, i32
  }
  func.func @transform_3(%arg0: i32, %arg1: i32) -> (i32, i32) {
    %c0_i32 = arith.constant 0 : i32
    %c0_i32_0 = arith.constant 0 : i32
    %c0_i32_1 = arith.constant 0 : i32
    return %c0_i32, %c0_i32_0 : i32, i32
  }
  func.func @transform_4(%arg0: i32, %arg1: i32) -> i32 {
    %c0_i32 = arith.constant 0 : i32
    %c0_i32_0 = arith.constant 0 : i32
    return %c0_i32 : i32
  }
  func.func @transform_5(%arg0: i32, %arg1: i32) -> (i32, i32) {
    %c0_i32 = arith.constant 0 : i32
    %c0_i32_0 = arith.constant 0 : i32
    return %arg0, %c0_i32 : i32, i32
  }
}

</mosaic_0001>

<bundles_post_ra>
// kernel: tpu_custom_call.1
= control target key start
LH: loop header
LB: loop body
LE: loop exit
PB: predicated region body
PF: predicated region fallthrough
CT: control target
= control target key end

     0   :  { %11 = vsyncpa [#allocation4], 0  ;;  %s539_s0 = inlined_call_operand.hbm [shape: f32[2,8,32], index: 0, kind: input, shape index: {}]   ;;  %s540_s1 = inlined_call_operand.hbm [shape: f32[2,32], index: 1, kind: input, shape index: {}]   ;;  %s541_s2 = inlined_call_operand.hbm [shape: f32[32,32], index: 2, kind: input, shape index: {}]   ;;  %s542_s3 = inlined_call_operand.hbm [shape: f32[1,32], index: 3, kind: input, shape index: {}]   ;;  %s543_s4 = inlined_call_operand.<no memory space> [shape: f32[1], index: 4, kind: input, shape index: {}]   ;;  %s544_s5 = inlined_call_operand.hbm [shape: f32[2,32], index: 5, kind: output, shape index: {}]  }
   0x1   :  { %12 = vsyncpa [#allocation7], 0 }
   0x2   :  { %13 = vsyncpa [#allocation10], 0 }
   0x3   :  { %14 = vsyncpa [#allocation5], 0  ;;  %s422_s18 = smov [#allocation6]   ;;  %s423_s20 = smov [#allocation3]  }
   0x4   :  { %s33_s19 = sshll.u32 %s422_s18, 4  ;;  %s20_s21 = sshll.u32 %s423_s20, 4  ;;  %s34_s19 = int_to_ptr.vmem [resolvable:$true] %s33_s19  ;;  %s461_s21 = int_to_ptr.vmem [resolvable:$true] %s20_s21 }
   0x5   :  { %s304_s24 = scalar_lea.hbm %s540_s1, 32 }
   0x6   :  { %p305_p0 = scmp.ne.s32.totalorder %s540_s1, %s304_s24  ;;  %p308_p1 = scmp.lt.u32.totalorder %s304_s24, %s540_s1 }
   0x8   :  { %p310_p2 = pnand %p308_p1, %p305_p0 }
   0xa   :  { %313 = shalt.err (!%p310_p2)
}
   0xb   :  { %s314_s29 = scalar_lea.vmem %s34_s19, 32  ;;  %p319_p4 = scmp.lt.s32.totalorder %s34_s19, %s34_s19 }
   0xc   :  { %p315_p3 = scmp.ne.s32.totalorder %s34_s19, %s314_s29  ;;  %p320_p5 = scmp.lt.s32.totalorder %s314_s29, %s314_s29 }
   0xe   :  { %p321_p6 = por %p320_p5, %p319_p4 }
  0x10   :  { %p322_p7 = pnand %p321_p6, %p315_p3 }
  0x12   :  { %325 = shalt.err (!%p322_p7)
}
  0x13   :  { %36 = dma.hbm_to_vmem [thread:$0]  %s540_s1, 32, %s34_s19, [#allocation7]  }
  0x14   :  { %s326_s9 = scalar_lea.hbm %s539_s0, 256 }
  0x15   :  { %p327_p8 = scmp.ne.s32.totalorder %s539_s0, %s326_s9  ;;  %p330_p9 = scmp.lt.u32.totalorder %s326_s9, %s539_s0 }
  0x17   :  { %p332_p10 = pnand %p330_p9, %p327_p8 }
  0x19   :  { %335 = shalt.err (!%p332_p10)
}
  0x1a   :  { %s336_s14 = scalar_lea.vmem %s461_s21, 256  ;;  %p341_p12 = scmp.lt.s32.totalorder %s461_s21, %s461_s21 }
  0x1b   :  { %p337_p11 = scmp.ne.s32.totalorder %s461_s21, %s336_s14  ;;  %p342_p13 = scmp.lt.s32.totalorder %s336_s14, %s336_s14 }
  0x1d   :  { %p343_p0 = por %p342_p13, %p341_p12 }
  0x1f   :  { %p344_p1 = pnand %p343_p0, %p337_p11 }
  0x21   :  { %347 = shalt.err (!%p344_p1)
}
  0x22   :  { %s424_s1 = smov 128   ;;  %s425_s15 = smov 8  }
  0x23   :  { %26 = dma.hbm_to_vmem [thread:$0]  %s539_s0, 256, %s461_s21, [#allocation4], %s424_s1, %s424_s1, %s425_s15  }
  0x24   :  { %s426_s18 = smov [#allocation8]   ;;  %s427_s20 = smov [#allocation9]  }
  0x25   :  { %s42_s19 = sshll.u32 %s426_s18, 4  ;;  %s55_s22 = sshll.u32 %s427_s20, 4  ;;  %s43_s19 = int_to_ptr.vmem [resolvable:$true] %s42_s19  ;;  %s56_s22 = int_to_ptr.vmem [resolvable:$true] %s55_s22 }
  0x26   :  { %s348_s25 = scalar_lea.hbm %s541_s2, 512 }
  0x27   :  { %p349_p2 = scmp.ne.s32.totalorder %s541_s2, %s348_s25  ;;  %p352_p3 = scmp.lt.u32.totalorder %s348_s25, %s541_s2 }
  0x29   :  { %p354_p4 = pnand %p352_p3, %p349_p2 }
  0x2b   :  { %357 = shalt.err (!%p354_p4)
}
  0x2c   :  { %s358_s0 = scalar_lea.vmem %s43_s19, 512  ;;  %p363_p6 = scmp.lt.s32.totalorder %s43_s19, %s43_s19 }
  0x2d   :  { %p359_p5 = scmp.ne.s32.totalorder %s43_s19, %s358_s0  ;;  %p364_p7 = scmp.lt.s32.totalorder %s358_s0, %s358_s0 }
  0x2f   :  { %p365_p8 = por %p364_p7, %p363_p6 }
  0x31   :  { %p366_p9 = pnand %p365_p8, %p359_p5 }
  0x33   :  { %369 = shalt.err (!%p366_p9)
}
  0x34   :  { %48 = dma.hbm_to_vmem [thread:$0]  %s541_s2, 512, %s43_s19, [#allocation7], %s424_s1, %s424_s1, %s425_s15  }
  0x35   :  { %s370_s8 = scalar_lea.hbm %s542_s3, 16 }
  0x36   :  { %p371_p10 = scmp.ne.s32.totalorder %s542_s3, %s370_s8  ;;  %p374_p11 = scmp.lt.u32.totalorder %s370_s8, %s542_s3 }
  0x38   :  { %p376_p12 = pnand %p374_p11, %p371_p10 }
  0x3a   :  { %379 = shalt.err (!%p376_p12)
}
  0x3b   :  { %s380_s13 = scalar_lea.vmem %s56_s22, 16  ;;  %s384_s14 = scalar_lea.vmem %s56_s22, 32 }
  0x3c   :  { %p381_p13 = scmp.ne.s32.totalorder %s56_s22, %s380_s13  ;;  %p385_p0 = scmp.lt.s32.totalorder %s56_s22, %s56_s22 }
  0x3d   :  { %p386_p1 = scmp.lt.s32.totalorder %s384_s14, %s380_s13 }
  0x3f   :  { %p387_p2 = por %p386_p1, %p385_p0 }
  0x41   :  { %p388_p3 = pnand %p387_p2, %p381_p13 }
  0x43   :  { %391 = shalt.err (!%p388_p3)
}
  0x44   :  { %58 = dma.hbm_to_vmem [thread:$0]  %s542_s3, 16, %s56_s22, [#allocation10]  }
  0x45   :  { %414 = dma.done.wait [#allocation4], 256  }
  0x46   :  { %415 = vsyncadd [#allocation4], 4294967040 }
  0x47   :  { %416 = dma.done.wait [#allocation7], 544  }
  0x48   :  { %417 = vsyncadd [#allocation7], 4294966752 }
  0x49   :  { %418 = dma.done.wait [#allocation10], 16  }
  0x4a   :  { %419 = vsyncadd [#allocation10], 4294967280  ;;  %vm79_vm0 = vcmask 261120   ;;  %v75_v0 = vld [vmem:[#allocation8] sm:$0xff]  ;;  %v76_v1 = vld [vmem:[#allocation8 + $0x8] sm:$0xff]  ;;  %v174_v10 = vlaneseq  ;;  %vm238_vm1 = vcmask 254976   ;;  %v215_v33 = vstv %s543_s4 }
  0x4b   :  { %v77_v2 = vld [vmem:[#allocation8 + $0x10] sm:$0xff]  ;;  %v287_v3 = vpack.c.bf16 %v76_v1, %v75_v0  ;;  %v78_v4 = vld [vmem:[#allocation8 + $0x18] sm:$0xff]  ;;  %v428_v8 = vmov 1966171168   ;;  %v269_v25 = vld [vmem:[#allocation9] ss:$0 sm:$0xff] }
  0x4c   :  { %v73_v5 = vld [vmem:[#allocation3] sm:$0xff]  ;;  %v291_v6 = vpack.c.bf16 %v78_v4, %v77_v2  ;;  %v74_v7 = vld [vmem:[#allocation3 + $0x8] sm:$0xff]  ;;  %v172_v9 = vunpack.c.l.s4 %v428_v8  ;;  %v175_v12 = vshrl.u32 %v174_v10, 7  ;;  %v429_v32 = vmov 0.0   ;;  %s430_s4 = smov [#allocation11]  }
  0x4d   :  { %284 = vmatprep.mubr.msk.f32.mxu0 %vm79_vm0, %v73_v5  ;;  %288 = vmatprep.subr.bf16.mxu0 %v287_v3  ;;  %v268_v13 = vld.sshfl [vmem:[#allocation6] sm:$0x11 pattern:$0x75316420]  ;;  %239 = vst.msk [vmem:[#allocation11] sm:$0x3] %vm238_vm1, %v429_v32 }
  0x4e   :  { %290 = vmatpush3.bf16.msra.mxu0 %v287_v3  ;;  %v173_v11 = vunpack.c.0.s8 %v172_v9  ;;  %v170_v14 = vcombine.high %v268_v13, %v268_v13  ;;  %v187_v17 = vsub.s32 0, %v175_v12  ;;  %vm243_vm2 = vcmask 1041409   ;;  %s255_s16 = sshll.u32 %s430_s4, 4  ;;  %s256_s16 = int_to_ptr.vmem [resolvable:$true] %s255_s16 }
  0x4f   :  { %292 = vmatprep.subr.bf16.mxu0 %v291_v6  ;;  %s392_s17 = scalar_lea.vmem %s256_s16, 32  ;;  %p397_p5 = scmp.lt.s32.totalorder %s256_s16, %s256_s16 }
  0x50   :  { %v176_v15 = vsub.s32 %v173_v11, %v175_v12  ;;  %p393_p4 = scmp.ne.s32.totalorder %s256_s16, %s392_s17  ;;  %p398_p6 = scmp.lt.s32.totalorder %s392_s17, %s392_s17 }
  0x52   :  { %294 = vmatpush3.bf16.msra.mxu0 %v291_v6  ;;  %v184_v16 = vrot.slane %v170_v14, %v176_v15  ;;  %v177_v18 = vrot.slane %v268_v13, %v176_v15  ;;  %p399_p7 = por %p398_p6, %p397_p5 }
  0x54   :  { %v192_v19 = vrot.slane %v184_v16, %v187_v17  ;;  %v188_v20 = vrot.slane %v177_v18, %v187_v17  ;;  %v240_v54 = vld [vmem:[#allocation11] sm:$0x3]  ;;  %p400_p8 = pnand %p399_p7, %p393_p4 }
  0x55   :  { %285 = vmatmul.mubr.msk.f32.vlgmr.msra.gmra.mrb[0].mxu0 %vm79_vm0, %v74_v7 }
 0x128   :  { %v286_v21 = vpop.f32.mrb[0].mxu0 }
 0x129   :  { %v196_v22 = vadd.f32 %v286_v21, %v192_v19  ;;  %v152_v23 = vpop.f32.mrb[1].mxu0 }
 0x12a   :  { %v195_v24 = vadd.f32 %v188_v20, %v152_v23 }
 0x12b   :  { %v198_v26 = vmax.f32 %v196_v22, 0.0 }
 0x12c   :  { %v197_v27 = vmax.f32 %v195_v24, 0.0 }
 0x12d   :  { %v207_v30 = vmul.f32 %v269_v25, %v198_v26 }
 0x12e   :  { %v206_v28 = vmul.f32 %v269_v25, %v197_v27 }
 0x12f   :  { %v211_v31 = vsel %vm79_vm0, %v207_v30, 0.0 }
 0x130   :  { %v208_v29 = vsel %vm79_vm0, %v206_v28, 0.0 }
 0x131   :  { %209 = vadd.xlane.f32.xlu0 %v208_v29 }
 0x135   :  { %212 = vadd.xlane.f32.xlu0 %v211_v31 }
 0x1be   :  { %v210_v34 = vpop.xlane.xlu0 %209 }
 0x1bf   :  { %v216_v35 = vadd.f32 %v215_v33, %v210_v34 }
 0x1c1   :  { %v218_v36 = vmul.f32 %v216_v35, %v73_v5 }
 0x1c2   :  { %v213_v37 = vpop.xlane.xlu0 %212 }
 0x1c3   :  { %v220_v38 = vsel %vm79_vm0, %v218_v36, 0.0  ;;  %v217_v39 = vadd.f32 %v215_v33, %v213_v37 }
 0x1c4   :  { %v221_v40 = vrot.slane %v220_v38, 4 }
 0x1c5   :  { %v219_v41 = vmul.f32 %v217_v39, %v74_v7 }
 0x1c6   :  { %v222_v42 = vadd.f32 %v221_v40, %v220_v38 }
 0x1c7   :  { %v227_v43 = vsel %vm79_vm0, %v219_v41, 0.0 }
 0x1c8   :  { %v223_v44 = vrot.slane %v222_v42, 2  ;;  %v228_v45 = vrot.slane %v227_v43, 4 }
 0x1ca   :  { %v224_v46 = vadd.f32 %v223_v44, %v222_v42  ;;  %v229_v47 = vadd.f32 %v228_v45, %v227_v43 }
 0x1cc   :  { %v230_v48 = vrot.slane %v229_v47, 2  ;;  %v225_v49 = vrot.slane %v224_v46, 1 }
 0x1ce   :  { %v231_v50 = vadd.f32 %v230_v48, %v229_v47  ;;  %v226_v52 = vadd.f32 %v225_v49, %v224_v46 }
 0x1d0   :  { %v232_v51 = vrot.slane %v231_v50, 1 }
 0x1d2   :  { %v233_v53 = vadd.f32 %v232_v51, %v231_v50 }
 0x1d4   :  { %v244_v55 = vsel %vm243_vm2, %v233_v53, %v226_v52 }
 0x1d5   :  { %v246_v56 = vadd.f32 %v244_v55, %v240_v54 }
 0x1d7   :  { %248 = vst.msk [vmem:[#allocation11] sm:$0x3] %vm238_vm1, %v246_v56 }
 0x1d8   :  { %403 = shalt.err (!%p400_p8)
}
 0x1d9   :  { %s404_s20 = scalar_lea.hbm %s544_s5, 32 }
 0x1da   :  { %p405_p9 = scmp.ne.s32.totalorder %s544_s5, %s404_s20  ;;  %p408_p10 = scmp.lt.u32.totalorder %s404_s20, %s544_s5 }
 0x1dc   :  { %p410_p11 = pnand %p408_p10, %p405_p9 }
 0x1de   :  { %413 = shalt.err (!%p410_p11)
}
 0x1df   :  { %258 = dma.vmem_to_hbm [thread:$0]  %s256_s16, 32, %s544_s5, [#allocation5]  }
 0x1e0   :  { %420 = dma.done.wait [#allocation5], 32  }
 0x1e1   :  { %421 = vsyncadd [#allocation5], 4294967264 }
 0x1e2   :  { %262 = vsyncpa [#allocation4], 1 }
 0x1e3   :  { %263 = vsyncpa [#allocation7], 1 }
 0x1e4   :  { %264 = vsyncpa [#allocation10], 1 }
 0x1e5   :  { %265 = vsyncpa [#allocation5], 1 }

</bundles_post_ra>
